<compile_context>
chip_gen: v7x
topology: tpu7x:2x2x1
jax: 0.10.0
libtpu: 0.0.40
codegen_flags: <defaults>
</compile_context>

<pallas_src>
import jax
import jax.numpy as jnp
from jax.experimental import pallas as pl
from jax.experimental.pallas import tpu as pltpu


def _normalize_kernel(img_ref, params_ref, out_ref):
    # img_ref / out_ref : (rows, lane) tile of the flattened (B*C, H*W) image.
    # params_ref        : (rows, 2) f32 — col 0 = per-row mean, col 1 = 1/std.
    mean = params_ref[:, 0:1]       # (rows, 1), broadcast across lanes
    inv_std = params_ref[:, 1:2]    # (rows, 1), broadcast across lanes
    x = img_ref[...].astype(jnp.float32)
    out_ref[...] = ((x - mean) * inv_std).astype(out_ref.dtype)


def _round_up(x, m):
    return ((x + m - 1) // m) * m


def _vmem_budget():
    """Generation-aware (per-ref tile budget, scoped VMEM limit) in bytes."""
    physical = 128 << 20  # v5e / v6e default physical VMEM
    try:
        physical = int(getattr(pltpu.get_tpu_info(), "vmem_capacity_bytes", physical))
    except Exception:
        pass
    if physical <= (64 << 20):
        # v7x-class: 64 MiB physical VMEM, ~3.2 TB/s HBM -> bigger tiles to
        # amortize the fixed per-step overhead; 4x6 MiB footprint << 48 MiB.
        return 6 << 20, 48 << 20
    # v5e / v6e: 128 MiB physical; 4 MiB/ref -> ~16 MiB double-buffered footprint.
    return 4 << 20, 64 << 20


def _pick_tiles(R, L, itemsize, budget):
    """cdiv-friendly (rows, lane) tile: lane-dense, sublane-packed rows, ~budget bytes."""
    # Sublane-packing multiple: 8 for f32, 16 for bf16, 32 for int8/fp8.
    sub = max(8, 32 // max(1, itemsize))

    # Lane tile: keep the full flattened spatial axis if a `sub`-row slab fits
    # the budget (or it is already <=128 lanes wide); otherwise the largest
    # multiple of 128 that fits (ragged edge handled by the cdiv grid).
    if L <= 128 or sub * L * itemsize <= budget:
        lane = L
    else:
        lane = max(128, (budget // (sub * itemsize)) // 128 * 128)

    # Row tile: largest multiple of `sub` within the budget; full extent if
    # the whole row axis fits (a full-dim block is always layout-legal).
    rows = max(sub, (budget // (lane * itemsize)) // sub * sub)
    if rows >= R:
        rows = R

    # Guarantee >=2 grid blocks along a 'parallel' axis when splittable so both
    # v7x TensorCores stream (harmless ~0.35us extra on 1-TC v5e/v6e).
    if pl.cdiv(R, rows) * pl.cdiv(L, lane) == 1:
        if R > sub:
            rows = _round_up(pl.cdiv(R, 2), sub)
        elif lane > 128:
            lane = _round_up(pl.cdiv(L, 2), 128)
    return rows, lane


def normalization_forward(img, mean, std):
    """(img - mean[None, :, None, None]) / std[None, :, None, None] for NCHW img."""
    B, C, H, W = img.shape
    R, L = B * C, H * W

    # Flatten spatial dims so the lane axis is H*W (contiguous reshape, free).
    x = img.reshape(R, L)

    # Fused per-row parameters in f32: col 0 = mean, col 1 = 1/std.
    mean_f32 = jnp.asarray(mean, jnp.float32)
    inv_std_f32 = 1.0 / jnp.asarray(std, jnp.float32)
    params = jnp.stack([jnp.tile(mean_f32, B), jnp.tile(inv_std_f32, B)], axis=-1)

    itemsize = jnp.dtype(img.dtype).itemsize
    budget, vmem_limit = _vmem_budget()
    rows, lane = _pick_tiles(R, L, itemsize, budget)
    grid = (pl.cdiv(R, rows), pl.cdiv(L, lane))

    out = pl.pallas_call(
        _normalize_kernel,
        out_shape=jax.ShapeDtypeStruct((R, L), img.dtype),
        grid=grid,
        in_specs=[
            pl.BlockSpec((rows, lane), lambda i, j: (i, j)),
            pl.BlockSpec((rows, 2), lambda i, j: (i, 0)),
        ],
        out_specs=pl.BlockSpec((rows, lane), lambda i, j: (i, j)),
        compiler_params=pltpu.CompilerParams(
            dimension_semantics=("parallel", "parallel"),
            vmem_limit_bytes=vmem_limit,
        ),
        cost_estimate=pl.CostEstimate(
            flops=2 * R * L,
            transcendentals=0,
            bytes_accessed=2 * R * L * itemsize + R * 2 * 4,
        ),
    )(x, params)

    return out.reshape(B, C, H, W)


if __name__ == "__main__":
    key = jax.random.PRNGKey(0)
    k_img, k_mean, k_std = jax.random.split(key, 3)

    B, C, H, W = 2, 4, 16, 16
    img = jax.random.normal(k_img, (B, C, H, W), dtype=jnp.float32)
    # deterministic "parameters" (would be e.g. ImageNet mean/std in practice)
    mean = jax.random.uniform(k_mean, (C,), dtype=jnp.float32, minval=0.2, maxval=0.8)
    std = jax.random.uniform(k_std, (C,), dtype=jnp.float32, minval=0.1, maxval=0.5)

    out = normalization_forward(img, mean, std)
    out = jax.block_until_ready(out)

    # reference check (plain JAX, mirrors PyTorch broadcasting of (C,1,1) buffers)
    ref = (img - mean[None, :, None, None]) / std[None, :, None, None]
    assert jnp.allclose(out, ref, atol=1e-6, rtol=1e-6), "mismatch vs reference"

    print("KERNEL_OK")
</pallas_src>

<mosaic_0001>
module attributes {stable_mosaic.version = 11 : i64} {
  func.func @_normalize_kernel(%arg0: i32, %arg1: i32, %arg2: memref<8x128xf32, #tpu.memory_space<vmem>>, %arg3: memref<8x2xf32, #tpu.memory_space<vmem>>, %arg4: memref<8x128xf32, #tpu.memory_space<vmem>>) attributes {dimension_semantics = [#tpu.dimension_semantics<parallel>, #tpu.dimension_semantics<parallel>], iteration_bounds = array<i64: 1, 2>, scalar_prefetch = 0 : i64, scratch_operands = 0 : i64, tpu.core_type = #tpu.core_type<tc>, window_params = [{transform_indices = @transform_0, window_bounds = array<i64: 8, 128>}, {transform_indices = @transform_1, window_bounds = array<i64: 8, 2>}, {transform_indices = @transform_2, window_bounds = array<i64: 8, 128>}]} {
    %c0 = arith.constant 0 : index
    %c0_0 = arith.constant 0 : index
    %0 = vector.load %arg3[%c0, %c0_0] : memref<8x2xf32, #tpu.memory_space<vmem>>, vector<8x1xf32>
    %c0_1 = arith.constant 0 : index
    %c1 = arith.constant 1 : index
    %1 = vector.load %arg3[%c0_1, %c1] : memref<8x2xf32, #tpu.memory_space<vmem>>, vector<8x1xf32>
    %c0_2 = arith.constant 0 : index
    %c0_3 = arith.constant 0 : index
    %2 = vector.load %arg2[%c0_2, %c0_3] : memref<8x128xf32, #tpu.memory_space<vmem>>, vector<8x128xf32>
    %3 = vector.broadcast %0 : vector<8x1xf32> to vector<8x128xf32>
    %4 = arith.subf %2, %3 : vector<8x128xf32>
    %5 = vector.broadcast %1 : vector<8x1xf32> to vector<8x128xf32>
    %6 = arith.mulf %4, %5 : vector<8x128xf32>
    %c0_4 = arith.constant 0 : index
    %c0_5 = arith.constant 0 : index
    %7 = vector.load %arg4[%c0_4, %c0_5] : memref<8x128xf32, #tpu.memory_space<vmem>>, vector<8x128xf32>
    tpu.vector_store %arg4[%c0_4, %c0_5], %6 {strides = array<i32>} : memref<8x128xf32, #tpu.memory_space<vmem>>, vector<8x128xf32>,
    return
  }
  func.func @transform_0(%arg0: i32, %arg1: i32) -> (i32, i32) {
    %c0_i32 = arith.constant 0 : i32
    return %arg0, %arg1 : i32, i32
  }
  func.func @transform_1(%arg0: i32, %arg1: i32) -> (i32, i32) {
    %c0_i32 = arith.constant 0 : i32
    %c0_i32_0 = arith.constant 0 : i32
    return %arg0, %c0_i32 : i32, i32
  }
  func.func @transform_2(%arg0: i32, %arg1: i32) -> (i32, i32) {
    %c0_i32 = arith.constant 0 : i32
    return %arg0, %arg1 : i32, i32
  }
}

</mosaic_0001>

<bundles_post_ra>
// kernel: tpu_custom_call.1
= control target key start
LH: loop header
LB: loop body
LE: loop exit
PB: predicated region body
PF: predicated region fallthrough
CT: control target
= control target key end

     0   :  { %7 = vsyncpa [#allocation3], 0  ;;  %s795_s0 = inlined_call_operand.hbm [shape: f32[8,256], index: 0, kind: input, shape index: {}]   ;;  %s796_s1 = inlined_call_operand.hbm [shape: f32[8,2], index: 1, kind: input, shape index: {}]   ;;  %s797_s2 = inlined_call_operand.hbm [shape: f32[8,256], index: 2, kind: output, shape index: {}]  }
   0x1   :  { %9 = vsyncpa [#allocation3 + $0x1], 0 }
   0x2   :  { %10 = vsyncpa [#allocation6], 0 }
   0x3   :  { %11 = vsyncpa [#allocation4], 0 }
   0x4   :  { %13 = vsyncpa [#allocation4 + $0x1], 0  ;;  %s579_s9 = smov 0   ;;  %s581_s10 = smov 0  }
   0x5   :  { %s583_s11 = smov 0   ;;  %s585_s12 = smov 0  }
   0x6   :  { %s587_s13 = smov 0   ;;  %s589_s14 = smov 0  }
   0x7 LB: > { %s321_s15 = sadd.s32 4294967295, %s557_s14   ;;  %s322_s16 = sadd.s32 4294967294, %s557_s14   ;;  %s557_s14 = sphi %s589_s14, %s19_s14   ;;  %s553_s13 = sphi %s587_s13, %s822_s13   ;;  %s549_s12 = sphi %s585_s12, %s821_s12   ;;  %s545_s11 = sphi %s583_s11, %s820_s11   ;;  %s541_s10 = sphi %s581_s10, %s819_s10   ;;  %s537_s9 = sphi %s579_s9, %s818_s9  }
   0x8   : > { %p53_p0 = scmp.ne.s32.totalorder %s541_s10, %s537_s9  ;;  %p613_p1 = scmp.eq.s32.totalorder %s321_s15, 0 }
   0x9   : > { %p617_p2 = scmp.eq.s32.totalorder %s321_s15, 1  ;;  %p111_p3 = scmp.eq.s32.totalorder %s322_s16, 1 }
   0xa   : > { %s802_s17 = scalar_select %p613_p1, 1, 0 }
   0xb   : > { %s803_s18 = scalar_select %p617_p2, 1, 0 }
   0xc   : > { %p623_p4 = por %p613_p1, %p53_p0  ;;  %p323_p5 = scmp.ge.s32.totalorder %s557_s14, 1 }
   0xd   : > { %p628_p6 = por %p111_p3, %p53_p0  ;;  %p118_p7 = scmp.lt.s32.totalorder %s557_s14, 3 }
   0xe   : > { %s804_s19 = scalar_select %p623_p4, 1, 0 }
   0xf   : > { %s805_s20 = scalar_select %p628_p6, 1, 0 }
  0x10   : > { %p633_p8 = pnand %p323_p5, %p118_p7  ;;  %s559_s22 = smov [#allocation5]  }
  0x11   : > { %s133_s23 = sshll.u32 %s559_s22, 4  ;;  %s28_s25 = sadd.s32 1, %s553_s13  ;;  %s134_s23 = int_to_ptr.vmem [resolvable:$true] %s133_s23 }
  0x12   : > { %s806_s21 = scalar_select %p633_p8, 1, 0 }
  0x13   : > { %p344_p10 = pneg %p633_p8  ;;  %s40_s26 = sadd.s32 1, %s545_s11 }
  0x14   : > { %p648_p12 = scmp.ge.s32.totalorder %s28_s25, 2  ;;  %s413_s30 = scalar_lea.hbm %s796_s1, 128 }
  0x15   : > { %p642_p11 = pnand %p344_p10, %p613_p1  ;;  %p414_p13 = scmp.ne.s32.totalorder %s796_s1, %s413_s30 }
  0x16   : > { %s808_s27 = scalar_select %p648_p12, 1, 0 }
  0x17   : > { %p415_p0 = pneg %p642_p11  ;;  %p420_p7 = scmp.lt.u32.totalorder %s413_s30, %s796_s1 }
  0x19   : > { %p416_p3 = pnand %p415_p0, %p414_p13 }
  0x1b   : > { %p417_p5 = pneg %p416_p3 }
  0x1d   : > { %p422_p10 = pnand %p420_p7, %p417_p5 }
  0x1f   : > { %425 = shalt.err (!%p422_p10)
}
  0x20   : > { %s426_s7 = scalar_lea.vmem %s134_s23, 128  ;;  %p434_p4 = scmp.lt.s32.totalorder %s134_s23, %s134_s23 }
  0x21   : > { %p427_p9 = scmp.ne.s32.totalorder %s134_s23, %s426_s7  ;;  %p435_p8 = scmp.lt.s32.totalorder %s426_s7, %s426_s7 }
  0x23   : > { %p429_p6 = pnand %p427_p9, %p415_p0  ;;  %p436_p2 = por %p435_p8, %p434_p4 }
  0x25   : > { %p430_p1 = pneg %p429_p6 }
  0x27   : > { %p437_p12 = pnand %p436_p2, %p430_p1 }
  0x29   : > { %440 = shalt.err (!%p437_p12)
}
  0x2a   : > { %347 = dma.hbm_to_vmem [thread:$0]  (!%p642_p11), %s796_s1, 128, %s134_s23, [#allocation6]  }
  0x2b   : > { %p809_p4 = scmp.ne.s32.totalorder %s808_s27, 0  ;;  %p47_p1 = scmp.ne.s32.totalorder %s545_s11, %s541_s10 }
  0x2c   : > { %p48_p2 = scmp.eq.s32.totalorder %s557_s14, 0  ;;  %p357_p6 = scmp.lt.s32.totalorder %s557_s14, 2 }
  0x2d   : > { %s824_s25 = smov (%p809_p4, %s28_s25), 0  ;;  %p810_p12 = scmp.ne.s32.totalorder %s803_s18, 0 }
  0x2e   : > { %s36_s16 = ssub.s32 %s553_s13, %s824_s25  ;;  %p49_p9 = por %p48_p2, %p47_p1 }
  0x2f   : > { %p38_p8 = scmp.eq.s32.totalorder %s36_s16, 0  ;;  %p680_p13 = por %p810_p12, %p47_p1 }
  0x30   : > { %s144_s24 = sand.u32 1, %s545_s11   ;;  %s327_s27 = sshll.u32 %s553_s13, 7 }
  0x31   : > { %s688_s28 = scalar_select %p38_p8, %s545_s11, %s40_s26  }
  0x32   : > { %s326_s23 = sshll.u32 %s144_s24, 3  ;;  %s694_s3 = scalar_lea.hbm %s795_s0, %s327_s27 }
  0x33   : > { %s148_s18 = scalar_lea.vmem [#allocation2], %s326_s23  ;;  %p698_p11 = pnand %p357_p6, %p49_p9 }
  0x34   : > { %s157_s4 = sshll.u32 %s148_s18, 4  ;;  %s145_s26 = scalar_lea.sflag [#allocation3], %s144_s24  ;;  %s696_s4 = int_to_ptr.vmem [resolvable:$true] %s157_s4 }
  0x35   : > { %s441_s6 = scalar_lea.hbm %s694_s3, 128  ;;  %p443_p3 = pneg %p698_p11 }
  0x36   : > { %p442_p0 = scmp.ne.s32.totalorder %s694_s3, %s441_s6  ;;  %s446_s15 = scalar_lea.hbm %s795_s0, 256 }
  0x37   : > { %p447_p10 = scmp.lt.u32.totalorder %s694_s3, %s795_s0  ;;  %p448_p4 = scmp.lt.u32.totalorder %s446_s15, %s441_s6 }
  0x38   : > { %p444_p5 = pnand %p443_p3, %p442_p0  ;;  %p450_p2 = scmp.lt.u32.totalorder %s441_s6, %s694_s3 }
  0x39   : > { %p449_p1 = por %p448_p4, %p447_p10 }
  0x3a   : > { %p445_p7 = pneg %p444_p5 }
  0x3b   : > { %p451_p6 = por %p450_p2, %p449_p1 }
  0x3d   : > { %p452_p8 = pnand %p451_p6, %p445_p7 }
  0x3f   : > { %455 = shalt.err (!%p452_p8)
}
  0x40   : > { %s456_s24 = scalar_lea.vmem %s696_s4, 128  ;;  %s560_s27 = smov [#allocation2]  }
  0x41   : > { %p457_p9 = scmp.ne.s32.totalorder %s696_s4, %s456_s24  ;;  %s461_s29 = sshll.u32 %s560_s27, 4  ;;  %s462_s29 = int_to_ptr.vmem [resolvable:$false] %s461_s29 }
  0x42   : > { %s463_s30 = scalar_lea.vmem %s462_s29, 256  ;;  %p464_p5 = scmp.lt.s32.totalorder %s696_s4, %s462_s29 }
  0x43   : > { %p459_p12 = pnand %p457_p9, %p443_p3  ;;  %p465_p10 = scmp.lt.s32.totalorder %s463_s30, %s456_s24 }
  0x45   : > { %p460_p0 = pneg %p459_p12  ;;  %p466_p4 = por %p465_p10, %p464_p5 }
  0x47   : > { %p467_p1 = pnand %p466_p4, %p460_p0 }
  0x49   : > { %470 = shalt.err (!%p467_p1)
}
  0x4a   : > { %351 = dma.hbm_to_vmem [thread:$0]  (!%p698_p11), %s694_s3, 128, %s696_s4, %s145_s26  }
  0x4b   : > { %p813_p7 = scmp.ne.s32.totalorder %s806_s21, 0 }
  0x4c   : > { %s730_s18 = sand.u32 (!%p813_p7), 1, %s541_s10   ;;  %p814_p3 = scmp.ne.s32.totalorder (!%p813_p7), %s804_s19, 0 }
  0x4d   : > { %166 = sbr.rel (%p813_p7) target bundleno = 239 (0xef), region = 28  ;;  %s329_s6 = sshll.u32 (!%p813_p7), %s730_s18, 3 }
  0x4e   : > { %s169_s7 = scalar_lea.sflag (!%p813_p7), [#allocation3], %s730_s18  ;;  %s172_s8 = scalar_lea.vmem (!%p813_p7), [#allocation2], %s329_s6 }
  0x54   : > { %524 = dma.done.wait (%p814_p3), %s169_s7, 128  }
  0x55   : > { %526 = vsyncadd (%p814_p3), %s169_s7, 4294967168  ;;  %p815_p2 = scmp.ne.s32.totalorder %s802_s17, 0 }
  0x57   : > { %528 = dma.done.wait (%p815_p2), [#allocation6], 128  }
  0x58   : > { %530 = vsyncadd (%p815_p2), [#allocation6], 4294967168  ;;  %v561_v0 = vmov 0   ;;  %v197_v1 = vld [vmem:[#allocation5] sm:$0xff]  ;;  %v562_v2 = vmov 1   ;;  %v198_v4 = vld [vmem:[%s172_s8] sm:$0xff] }
  0x59   : > { %411 = vset.pattern.permute.xlu0 %v561_v0  ;;  %s333_s19 = sshll.u32 %s549_s12, 7  ;;  %s196_s21 = scalar_lea.vmem [#allocation7], %s329_s6 }
  0x5a   : > { %201 = vperm.xlu0 %411, %v197_v1   ;;  %s227_s3 = sshll.u32 %s196_s21, 4  ;;  %s746_s5 = scalar_lea.hbm %s797_s2, %s333_s19  ;;  %s748_s3 = int_to_ptr.vmem [resolvable:$true] %s227_s3 }
  0x5b   : > { %s212_s26 = scalar_lea.sflag [#allocation4], %s730_s18  ;;  %s471_s15 = scalar_lea.vmem %s748_s3, 128 }
  0x5c   : > { %p472_p11 = scmp.ne.s32.totalorder %s748_s3, %s471_s15  ;;  %s563_s12 = smov [#allocation7]  }
  0x5d   : > { %s475_s16 = sshll.u32 %s563_s12, 4  ;;  %s476_s16 = int_to_ptr.vmem [resolvable:$false] %s475_s16 }
  0x5e   : > { %412 = vset.pattern.permute.xlu0 %v562_v2  ;;  %p473_p6 = pnand %p472_p11, %p680_p13  ;;  %s477_s23 = scalar_lea.vmem %s476_s16, 256 }
  0x5f   : > { %206 = vperm.xlu0 %412, %v197_v1   ;;  %p478_p9 = scmp.lt.s32.totalorder %s748_s3, %s476_s16  ;;  %p479_p12 = scmp.lt.s32.totalorder %s477_s23, %s471_s15 }
  0x60   : > { %p474_p8 = pneg %p473_p6 }
  0x61   : > { %p480_p0 = por %p479_p12, %p478_p9 }
  0x63   : > { %p481_p5 = pnand %p480_p0, %p474_p8 }
  0xd9   : > { %v202_v3 = vpop.permute.xlu0 %201 }
  0xda   : > { %v204_v5 = vsub.f32 %v198_v4, %v202_v3 }
  0xde   : > { %v207_v6 = vpop.permute.xlu0 %206 }
  0xdf   : > { %v209_v7 = vmul.f32 %v207_v6, %v204_v5 }
  0xe1   : > { %210 = vst [vmem:[%s196_s21] sm:$0xff] %v209_v7 }
  0xe2   : > { %484 = shalt.err (!%p481_p5)
}
  0xe3   : > { %s485_s24 = scalar_lea.hbm %s746_s5, 128  ;;  %s489_s30 = scalar_lea.hbm %s797_s2, 256 }
  0xe4   : > { %p486_p10 = scmp.ne.s32.totalorder %s746_s5, %s485_s24  ;;  %p490_p7 = scmp.lt.u32.totalorder %s746_s5, %s797_s2 }
  0xe5   : > { %p491_p3 = scmp.lt.u32.totalorder %s489_s30, %s485_s24  ;;  %p493_p11 = scmp.lt.u32.totalorder %s485_s24, %s746_s5 }
  0xe6   : > { %p487_p4 = pnand %p486_p10, %p680_p13 }
  0xe7   : > { %p492_p2 = por %p491_p3, %p490_p7 }
  0xe8   : > { %p488_p1 = pneg %p487_p4 }
  0xe9   : > { %p494_p6 = por %p493_p11, %p492_p2 }
  0xeb   : > { %p495_p8 = pnand %p494_p6, %p488_p1 }
  0xed   : > { %498 = shalt.err (!%p495_p8)
}
  0xee   : > { %342 = dma.vmem_to_hbm [thread:$0]  (%p680_p13), %s748_s3, 128, %s746_s5, %s212_s26  }
  0xef PF: > { %s239_s7 = sand.u32 1, %s537_s9   ;;  %p816_p9 = scmp.ne.s32.totalorder %s805_s20, 0 }
  0xf0   : > { %p817_p12 = scmp.ge.s32.totalorder %s557_s14, 2  ;;  %s240_s8 = scalar_lea.sflag [#allocation4], %s239_s7 }
  0xf2   : > { %p353_p0 = pnand %p817_p12, %p816_p9 }
  0xf4   : > { %532 = dma.done.wait (!%p353_p0), %s240_s8, 128  }
  0xf5   : > { %534 = vsyncadd (!%p353_p0), %s240_s8, 4294967168  ;;  %s19_s14 = sadd.s32 1, %s557_s14   ;;  %s818_s9 = smov %s541_s10 }
  0xf6   : > { %p16_p5 = scmp.ge.s32.totalorder %s19_s14, 4   ;;  %s819_s10 = smov %s545_s11 }
  0xf7   : > { %s820_s11 = smov %s688_s28  ;;  %s821_s12 = smov %s553_s13 }
  0xf8   : > { %s822_s13 = smov %s824_s25  ;;  %18 = sbr.rel (!%p16_p5) target bundleno = 7 (0x7), region = 78 }
  0xff   :  { %245 = vsyncpa [#allocation3], 1 }
 0x100   :  { %247 = vsyncpa [#allocation3 + $0x1], 1 }
 0x101   :  { %248 = vsyncpa [#allocation6], 1 }
 0x102   :  { %249 = vsyncpa [#allocation4], 1 }
 0x103   :  { %251 = vsyncpa [#allocation4 + $0x1], 1 }

</bundles_post_ra>
